<compile_context>
chip_gen: v5e
topology: v5e:2x2
jax: 0.10.0
libtpu: 0.0.40
codegen_flags: <defaults>
</compile_context>

<pallas_src>
import functools

import jax
import jax.numpy as jnp
from jax.experimental import pallas as pl
from jax.experimental.pallas import tpu as pltpu


def _pick_batch_tile(n_rows, row_elems, itemsize, block_bytes, min_steps=4):
    """Rows per x block: ~block_bytes big, >=min_steps grid steps when possible,
    and either a multiple of 128 (lane-dense out block) or the full row count."""
    rows = max(1, block_bytes // (row_elems * itemsize))
    if n_rows >= min_steps * 128:
        # Give the pipeline / both v7x TensorCores at least `min_steps` tiles.
        rows = min(rows, pl.cdiv(n_rows, min_steps))
    if rows >= n_rows:
        return n_rows            # single full block
    tile = (rows // 128) * 128   # multiple of 128 so the (.., tile) out block is lane-aligned
    return tile if tile > 0 else n_rows


def _logreg_kernel(x_ref, w_ref, b_ref, o_ref, *, n_fold, n_features):
    # x_ref: (tile, R*F)  input dtype, streamed batch tile (R folded rows per line)
    # w_ref: (1, R*F)     f32, resident across the whole grid (weight tiled R times)
    # b_ref: (1,)         f32, SMEM scalar
    # o_ref: (R, tile)    f32, lane-dense; o[r, i] = prediction for row i*R + r
    p = x_ref[...].astype(jnp.float32) * w_ref[...]        # VPU, promote once in-register
    bias = b_ref[0]                                        # scalar from SMEM
    for r in range(n_fold):                                # static, small unroll
        seg = p[:, r * n_features:(r + 1) * n_features]    # (tile, F) lane slice
        z = jnp.sum(seg, axis=-1, keepdims=True) + bias    # XLU lane reduce -> (tile, 1)
        y = jax.nn.sigmoid(z)                              # EUP
        o_ref[r:r + 1, :] = jnp.reshape(y, (1, -1))        # lane-dense row store


def logistic_regression(x, weight, bias, *, block_bytes=12 * 1024 * 1024):
    """x: [B, F] (f32/bf16), weight: [1, F] (torch layout), bias: [1] -> [B, 1] f32."""
    B, F = x.shape
    w = weight.reshape(1, F).astype(jnp.float32)
    b = bias.reshape(1).astype(jnp.float32)

    # Lane folding: pack R = 128//F consecutive rows into one 128-lane line.
    # The x reshape below is layout-preserving (row-major) -> free bitcast, no copy.
    R = 1
    if F < 128 and 128 % F == 0 and B % (128 // F) == 0:
        R = 128 // F
    Bf, RF = B // R, R * F
    xf = x.reshape(Bf, RF)
    wf = jnp.tile(w, (1, R))                       # (1, R*F), tiny one-time prep

    itemsize = jnp.dtype(x.dtype).itemsize
    tile = _pick_batch_tile(Bf, RF, itemsize, block_bytes)
    grid = (pl.cdiv(Bf, tile),)                    # ragged last block handled by Pallas masking

    kernel = functools.partial(_logreg_kernel, n_fold=R, n_features=F)

    out = pl.pallas_call(
        kernel,
        out_shape=jax.ShapeDtypeStruct((R, Bf), jnp.float32),
        grid_spec=pltpu.PrefetchScalarGridSpec(
            num_scalar_prefetch=0,
            grid=grid,
            in_specs=[
                pl.BlockSpec((tile, RF), lambda i: (i, 0)),          # x: streamed tiles
                pl.BlockSpec((1, RF), lambda i: (0, 0)),             # weight: resident
                pl.BlockSpec(memory_space=pltpu.MemorySpace.SMEM),   # bias: SMEM scalar
            ],
            out_specs=pl.BlockSpec((R, tile), lambda i: (0, i)),     # lane-dense output
        ),
        compiler_params=pltpu.CompilerParams(
            dimension_semantics=("parallel",),   # batch blocks independent (v7x 2-TC split)
            vmem_limit_bytes=48 * 1024 * 1024,   # explicit: required on v5e, safe on v7x 64 MiB
        ),
    )(xf, wf, b)

    # out[r, i] is the prediction for original row i*R + r -> interleave back.
    # This touches only B*4 bytes (negligible vs. x traffic); R==1 is a free bitcast.
    return out.T.reshape(B, 1)


if __name__ == "__main__":
    key = jax.random.PRNGKey(0)
    kx, kw, kb = jax.random.split(key, 3)

    batch, n_features = 8, 32

    x = jax.random.normal(kx, (batch, n_features), dtype=jnp.float32)

    # Deterministic init mimicking nn.Linear: U(-1/sqrt(F), 1/sqrt(F))
    bound = 1.0 / (n_features ** 0.5)
    weight = jax.random.uniform(kw, (1, n_features), minval=-bound, maxval=bound,
                                dtype=jnp.float32)
    bias = jax.random.uniform(kb, (1,), minval=-bound, maxval=bound,
                              dtype=jnp.float32)

    y = logistic_regression(x, weight, bias)
    y = jax.block_until_ready(y)

    # Reference check (plain JAX)
    y_ref = jax.nn.sigmoid(x @ weight.T + bias)
    assert y.shape == (batch, 1)
    assert jnp.allclose(y, y_ref, atol=1e-5, rtol=1e-5)

    print("KERNEL_OK")
</pallas_src>

<mosaic_0001>
module attributes {stable_mosaic.version = 11 : i64} {
  func.func @_logreg_kernel(%arg0: i32, %arg1: memref<2x128xf32, #tpu.memory_space<vmem>>, %arg2: memref<1x128xf32, #tpu.memory_space<vmem>>, %arg3: memref<1xf32, #tpu.memory_space<smem>>, %arg4: memref<4x2xf32, #tpu.memory_space<vmem>>) attributes {dimension_semantics = [#tpu.dimension_semantics<parallel>], iteration_bounds = array<i64: 1>, scalar_prefetch = 0 : i64, scratch_operands = 0 : i64, tpu.core_type = #tpu.core_type<tc>, window_params = [{transform_indices = @transform_0, window_bounds = array<i64: 2, 128>}, {pipeline_mode = #tpu.pipeline_mode<synchronous>, transform_indices = @transform_1, window_bounds = array<i64: 1, 128>}, {transform_indices = @transform_2, window_bounds = array<i64: 1>}, {transform_indices = @transform_3, window_bounds = array<i64: 4, 2>}]} {
    %c0 = arith.constant 0 : index
    %c0_0 = arith.constant 0 : index
    %0 = vector.load %arg1[%c0, %c0_0] : memref<2x128xf32, #tpu.memory_space<vmem>>, vector<2x128xf32>
    %c0_1 = arith.constant 0 : index
    %c0_2 = arith.constant 0 : index
    %1 = vector.load %arg2[%c0_1, %c0_2] : memref<1x128xf32, #tpu.memory_space<vmem>>, vector<1x128xf32>
    %2 = vector.broadcast %1 : vector<1x128xf32> to vector<2x128xf32>
    %3 = arith.mulf %0, %2 : vector<2x128xf32>
    %c0_3 = arith.constant 0 : index
    %4 = memref.load %arg3[%c0_3] : memref<1xf32, #tpu.memory_space<smem>>
    %5 = vector.extract_strided_slice %3 {offsets = [0, 0], sizes = [2, 32], strides = [1, 1]} : vector<2x128xf32> to vector<2x32xf32>
    %cst = arith.constant dense<0.000000e+00> : vector<2xf32>
    %6 = vector.multi_reduction <add>, %5, %cst [1] : vector<2x32xf32> to vector<2xf32>
    %7 = vector.shape_cast %6 : vector<2xf32> to vector<2x1xf32>
    %8 = vector.broadcast %4 : f32 to vector<2x1xf32>
    %9 = arith.addf %7, %8 : vector<2x1xf32>
    %10 = arith.negf %9 : vector<2x1xf32>
    %11 = math.exp %10 : vector<2x1xf32>
    %cst_4 = arith.constant 1.000000e+00 : f32
    %12 = vector.broadcast %cst_4 : f32 to vector<2x1xf32>
    %13 = arith.addf %12, %11 : vector<2x1xf32>
    %14 = arith.divf %12, %13 : vector<2x1xf32>
    %15 = vector.shape_cast %14 : vector<2x1xf32> to vector<1x2xf32>
    %c0_5 = arith.constant 0 : index
    %c0_6 = arith.constant 0 : index
    %16 = vector.load %arg4[%c0_5, %c0_6] : memref<4x2xf32, #tpu.memory_space<vmem>>, vector<1x2xf32>
    tpu.vector_store %arg4[%c0_5, %c0_6], %15 {strides = array<i32>} : memref<4x2xf32, #tpu.memory_space<vmem>>, vector<1x2xf32>,
    %17 = vector.extract_strided_slice %3 {offsets = [0, 32], sizes = [2, 32], strides = [1, 1]} : vector<2x128xf32> to vector<2x32xf32>
    %cst_7 = arith.constant dense<0.000000e+00> : vector<2xf32>
    %18 = vector.multi_reduction <add>, %17, %cst_7 [1] : vector<2x32xf32> to vector<2xf32>
    %19 = vector.shape_cast %18 : vector<2xf32> to vector<2x1xf32>
    %20 = vector.broadcast %4 : f32 to vector<2x1xf32>
    %21 = arith.addf %19, %20 : vector<2x1xf32>
    %22 = arith.negf %21 : vector<2x1xf32>
    %23 = math.exp %22 : vector<2x1xf32>
    %cst_8 = arith.constant 1.000000e+00 : f32
    %24 = vector.broadcast %cst_8 : f32 to vector<2x1xf32>
    %25 = arith.addf %24, %23 : vector<2x1xf32>
    %26 = arith.divf %24, %25 : vector<2x1xf32>
    %27 = vector.shape_cast %26 : vector<2x1xf32> to vector<1x2xf32>
    %c1 = arith.constant 1 : index
    %c0_9 = arith.constant 0 : index
    %28 = vector.load %arg4[%c1, %c0_9] : memref<4x2xf32, #tpu.memory_space<vmem>>, vector<1x2xf32>
    tpu.vector_store %arg4[%c1, %c0_9], %27 {strides = array<i32>} : memref<4x2xf32, #tpu.memory_space<vmem>>, vector<1x2xf32>,
    %29 = vector.extract_strided_slice %3 {offsets = [0, 64], sizes = [2, 32], strides = [1, 1]} : vector<2x128xf32> to vector<2x32xf32>
    %cst_10 = arith.constant dense<0.000000e+00> : vector<2xf32>
    %30 = vector.multi_reduction <add>, %29, %cst_10 [1] : vector<2x32xf32> to vector<2xf32>
    %31 = vector.shape_cast %30 : vector<2xf32> to vector<2x1xf32>
    %32 = vector.broadcast %4 : f32 to vector<2x1xf32>
    %33 = arith.addf %31, %32 : vector<2x1xf32>
    %34 = arith.negf %33 : vector<2x1xf32>
    %35 = math.exp %34 : vector<2x1xf32>
    %cst_11 = arith.constant 1.000000e+00 : f32
    %36 = vector.broadcast %cst_11 : f32 to vector<2x1xf32>
    %37 = arith.addf %36, %35 : vector<2x1xf32>
    %38 = arith.divf %36, %37 : vector<2x1xf32>
    %39 = vector.shape_cast %38 : vector<2x1xf32> to vector<1x2xf32>
    %c2 = arith.constant 2 : index
    %c0_12 = arith.constant 0 : index
    %40 = vector.load %arg4[%c2, %c0_12] : memref<4x2xf32, #tpu.memory_space<vmem>>, vector<1x2xf32>
    tpu.vector_store %arg4[%c2, %c0_12], %39 {strides = array<i32>} : memref<4x2xf32, #tpu.memory_space<vmem>>, vector<1x2xf32>,
    %41 = vector.extract_strided_slice %3 {offsets = [0, 96], sizes = [2, 32], strides = [1, 1]} : vector<2x128xf32> to vector<2x32xf32>
    %cst_13 = arith.constant dense<0.000000e+00> : vector<2xf32>
    %42 = vector.multi_reduction <add>, %41, %cst_13 [1] : vector<2x32xf32> to vector<2xf32>
    %43 = vector.shape_cast %42 : vector<2xf32> to vector<2x1xf32>
    %44 = vector.broadcast %4 : f32 to vector<2x1xf32>
    %45 = arith.addf %43, %44 : vector<2x1xf32>
    %46 = arith.negf %45 : vector<2x1xf32>
    %47 = math.exp %46 : vector<2x1xf32>
    %cst_14 = arith.constant 1.000000e+00 : f32
    %48 = vector.broadcast %cst_14 : f32 to vector<2x1xf32>
    %49 = arith.addf %48, %47 : vector<2x1xf32>
    %50 = arith.divf %48, %49 : vector<2x1xf32>
    %51 = vector.shape_cast %50 : vector<2x1xf32> to vector<1x2xf32>
    %c3 = arith.constant 3 : index
    %c0_15 = arith.constant 0 : index
    %52 = vector.load %arg4[%c3, %c0_15] : memref<4x2xf32, #tpu.memory_space<vmem>>, vector<1x2xf32>
    tpu.vector_store %arg4[%c3, %c0_15], %51 {strides = array<i32>} : memref<4x2xf32, #tpu.memory_space<vmem>>, vector<1x2xf32>,
    return
  }
  func.func @transform_0(%arg0: i32) -> (i32, i32) {
    %c0_i32 = arith.constant 0 : i32
    %c0_i32_0 = arith.constant 0 : i32
    return %arg0, %c0_i32 : i32, i32
  }
  func.func @transform_1(%arg0: i32) -> (i32, i32) {
    %c0_i32 = arith.constant 0 : i32
    %c0_i32_0 = arith.constant 0 : i32
    %c0_i32_1 = arith.constant 0 : i32
    return %c0_i32, %c0_i32_0 : i32, i32
  }
  func.func @transform_2(%arg0: i32) -> i32 {
    %c0_i32 = arith.constant 0 : i32
    %c0_i32_0 = arith.constant 0 : i32
    return %c0_i32 : i32
  }
  func.func @transform_3(%arg0: i32) -> (i32, i32) {
    %c0_i32 = arith.constant 0 : i32
    %c0_i32_0 = arith.constant 0 : i32
    return %c0_i32, %arg0 : i32, i32
  }
}

</mosaic_0001>

<bundles_post_ra>
// kernel: tpu_custom_call.1
= control target key start
LH: loop header
LB: loop body
LE: loop exit
PB: predicated region body
PF: predicated region fallthrough
CT: control target
= control target key end

     0   :  { %9 = vsyncpa [#allocation4], 0  ;;  %s215_s15 = smov [#allocation3]   ;;  %s270_s0 = inlined_call_operand.vmem [shape: f32[2,128], index: 0, kind: input, shape index: {}]   ;;  %s271_s1 = inlined_call_operand.hbm [shape: f32[1,128], index: 1, kind: input, shape index: {}]   ;;  %s272_s2 = inlined_call_operand.<no memory space> [shape: f32[1], index: 2, kind: input, shape index: {}]   ;;  %s273_s3 = inlined_call_operand.vmem [shape: f32[4,2], index: 3, kind: output, shape index: {}]  }
   0x1   :  { %s17_s14 = sshll.u32 %s271_s1, 4  ;;  %s19_s16 = sshll.u32 %s215_s15, 4  ;;  %s18_s14 = int_to_ptr.hbm [resolvable:$true] %s17_s14  ;;  %s20_s16 = int_to_ptr.vmem [resolvable:$true] %s19_s16 }
   0x2   :  { %22 = dma.hbm_to_vmem [thread:$0]  %s18_s14, 16, %s20_s16, [#allocation4]  }
   0x3   :  { %213 = dma.done.wait [#allocation4], 16  }
   0x4   :  { %214 = vsyncadd [#allocation4], 4294967280  ;;  %v29_v0 = vld [vmem:[%s270_s0] sm:$0x3]  ;;  %s216_s19 = smov 32   ;;  %s217_s20 = smov 96   ;;  %v40_v10 = vstv %s272_s2  ;;  %v62_v18 = vlaneseq }
   0x5   :  { %v172_v1 = vld [vmem:[#allocation3] ss:$0 sm:$0xff]  ;;  %s218_s21 = smov 64   ;;  %vm36_vm0 = vcmask 254976   ;;  %vm66_vm5 = vcmask 8192  }
   0x6   :  { %v34_v2 = vmul.f32 %v172_v1, %v29_v0  ;;  %v248_v24 = vand.u32 127, %v62_v18 }
   0x8   :  { %129 = vrot.lane.b32.xlu1 %v34_v2, %s216_s19  ;;  %69 = vrot.lane.b32.xlu0 %v34_v2, %s217_s20  ;;  %v37_v3 = vsel %vm36_vm0, %v34_v2, 0.0 }
  0x10   :  { %99 = vrot.lane.b32.xlu0 %v34_v2, %s218_s21 }
  0x32   :  { %38 = vadd.xlane.f32.xlu1 %v37_v3 }
  0x7a   :  { %v130_v4 = vpop.permute.xlu1 %129  ;;  %v70_v5 = vpop.permute.xlu0 %69 }
  0x7b   :  { %v132_v6 = vsel %vm36_vm0, %v130_v4, 0.0  ;;  %v72_v7 = vsel %vm36_vm0, %v70_v5, 0.0 }
  0x7c   :  { %133 = vadd.xlane.f32.xlu0 %v132_v6  ;;  %73 = vadd.xlane.f32.xlu2 %v72_v7 }
  0x82   :  { %v100_v8 = vpop.permute.xlu0 %99 }
  0x83   :  { %v102_v9 = vsel %vm36_vm0, %v100_v8, 0.0 }
  0x84   :  { %103 = vadd.xlane.f32.xlu2 %v102_v9 }
  0xa5   :  { %v39_v11 = vpop.xlane.xlu1 %38 }
  0xa6   :  { %v41_v12 = vadd.f32 %v40_v10, %v39_v11 }
  0xa8   :  { %v164_v13 = vmul.f32 -1.442695, %v41_v12 }
  0xaa   :  { %173 = vpow2.f32 %v164_v13 }
  0xb0   :  { %v174_v14 = vpop.eup %173 }
  0xb1   :  { %v45_v15 = vadd.f32 1.0, %v174_v14 }
  0xb3   :  { %175 = vrcp.f32 %v45_v15  ;;  %v57_v19 = vand.u32 2147483648, %v45_v15  ;;  %vm51_vm1 = vweird.f32 %v45_v15  ;;  %v55_v21 = vand.u32 2147483647, %v45_v15 }
  0xb5   :  { %v58_v23 = vor.u32 1.1754944e-38, %v57_v19  ;;  %vm56_vm4 = vcmp.eq.f32.partialorder %v55_v21, 8.507059e+37 }
  0xb9   :  { %v176_v16 = vpop.eup %175 }
  0xba   :  { %v47_v17 = vmul.f32 %v176_v16, %v45_v15  ;;  %vm52_vm2 = vweird.f32 %v176_v16 }
  0xbb   :  { %vm53_vm3 = vmor %vm51_vm1, %vm52_vm2 }
  0xbc   :  { %v48_v20 = vsub.f32 1.0, %v47_v17 }
  0xbe   :  { %v49_v22 = vmul.f32 %v176_v16, %v48_v20 }
  0xc0   :  { %v50_v25 = vadd.f32 %v176_v16, %v49_v22 }
  0xc2   :  { %v54_v26 = vsel %vm53_vm3, %v176_v16, %v50_v25 }
  0xc3   :  { %v59_v27 = vsel %vm56_vm4, %v58_v23, %v54_v26 }
  0xc4   :  { %v64_v28 = vperm.slane %v59_v27, %v248_v24 }
  0xc6   :  { %67 = vst.msk [vmem:[%s273_s3] sm:$0x1] %vm66_vm5, %v64_v28 }
  0xef   :  { %v74_v29 = vpop.xlane.xlu2 %73  ;;  %v134_v30 = vpop.xlane.xlu0 %133 }
  0xf0   :  { %v75_v31 = vadd.f32 %v74_v29, %v40_v10  ;;  %v135_v32 = vadd.f32 %v134_v30, %v40_v10 }
  0xf2   :  { %v165_v33 = vmul.f32 -1.442695, %v75_v31  ;;  %v167_v34 = vmul.f32 -1.442695, %v135_v32 }
  0xf4   :  { %177 = vpow2.f32 %v165_v33 }
  0xf5   :  { %179 = vpow2.f32 %v167_v34 }
  0xf7   :  { %v104_v35 = vpop.xlane.xlu2 %103 }
  0xf8   :  { %v105_v36 = vadd.f32 %v104_v35, %v40_v10 }
  0xfa   :  { %v178_v37 = vpop.eup %177  ;;  %v166_v38 = vmul.f32 -1.442695, %v105_v36 }
  0xfb   :  { %v180_v39 = vpop.eup %179  ;;  %v79_v40 = vadd.f32 1.0, %v178_v37 }
  0xfc   :  { %v139_v41 = vadd.f32 1.0, %v180_v39  ;;  %181 = vpow2.f32 %v166_v38 }
  0xfd   :  { %183 = vrcp.f32 %v79_v40  ;;  %v91_v49 = vand.u32 2147483648, %v79_v40  ;;  %v89_v52 = vand.u32 2147483647, %v79_v40  ;;  %vm85_vm9 = vweird.f32 %v79_v40 }
  0xfe   :  { %185 = vrcp.f32 %v139_v41  ;;  %v151_v53 = vand.u32 2147483648, %v139_v41  ;;  %vm145_vm7 = vweird.f32 %v139_v41  ;;  %v149_v55 = vand.u32 2147483647, %v139_v41 }
  0xff   :  { %v92_v58 = vor.u32 1.1754944e-38, %v91_v49  ;;  %vm90_vm11 = vcmp.eq.f32.partialorder %v89_v52, 8.507059e+37 }
 0x100   :  { %v152_v61 = vor.u32 1.1754944e-38, %v151_v53  ;;  %vm150_vm13 = vcmp.eq.f32.partialorder %v149_v55, 8.507059e+37 }
 0x102   :  { %v182_v42 = vpop.eup %181 }
 0x103   :  { %v184_v43 = vpop.eup %183  ;;  %v109_v44 = vadd.f32 1.0, %v182_v42 }
 0x104   :  { %v186_v45 = vpop.eup %185  ;;  %v81_v46 = vmul.f32 %v184_v43, %v79_v40  ;;  %vm86_vm6 = vweird.f32 %v184_v43 }
 0x105   :  { %v141_v47 = vmul.f32 %v186_v45, %v139_v41  ;;  %187 = vrcp.f32 %v109_v44  ;;  %vm146_vm8 = vweird.f32 %v186_v45  ;;  %vm87_vm10 = vmor %vm85_vm9, %vm86_vm6  ;;  %v121_v5 = vand.u32 2147483648, %v109_v44 }
 0x106   :  { %v82_v48 = vsub.f32 1.0, %v81_v46  ;;  %vm147_vm12 = vmor %vm145_vm7, %vm146_vm8  ;;  %v119_v7 = vand.u32 2147483647, %v109_v44  ;;  %vm115_vm15 = vweird.f32 %v109_v44 }
 0x107   :  { %v142_v50 = vsub.f32 1.0, %v141_v47  ;;  %v122_v9 = vor.u32 1.1754944e-38, %v121_v5 }
 0x108   :  { %v83_v51 = vmul.f32 %v184_v43, %v82_v48  ;;  %vm120_vm1 = vcmp.eq.f32.partialorder %v119_v7, 8.507059e+37 }
 0x109   :  { %v143_v54 = vmul.f32 %v186_v45, %v142_v50 }
 0x10a   :  { %v84_v56 = vadd.f32 %v184_v43, %v83_v51 }
 0x10b   :  { %v188_v57 = vpop.eup %187  ;;  %v144_v59 = vadd.f32 %v186_v45, %v143_v54 }
 0x10c   :  { %v88_v60 = vsel %vm87_vm10, %v184_v43, %v84_v56  ;;  %v111_v62 = vmul.f32 %v188_v57, %v109_v44  ;;  %vm116_vm14 = vweird.f32 %v188_v57 }
 0x10d   :  { %v93_v63 = vsel %vm90_vm11, %v92_v58, %v88_v60  ;;  %v148_v0 = vsel %vm147_vm12, %v186_v45, %v144_v59  ;;  %vm117_vm0 = vmor %vm115_vm15, %vm116_vm14 }
 0x10e   :  { %v96_v1 = vperm.slane %v93_v63, %v248_v24  ;;  %v153_v2 = vsel %vm150_vm13, %v152_v61, %v148_v0  ;;  %v112_v3 = vsub.f32 1.0, %v111_v62 }
 0x10f   :  { %v156_v4 = vperm.slane %v153_v2, %v248_v24 }
 0x110   :  { %98 = vst.msk [vmem:[%s273_s3 + $0x1] sm:$0x1] %vm66_vm5, %v96_v1  ;;  %v113_v6 = vmul.f32 %v188_v57, %v112_v3 }
 0x111   :  { %158 = vst.msk [vmem:[%s273_s3 + $0x3] sm:$0x1] %vm66_vm5, %v156_v4 }
 0x112   :  { %v114_v8 = vadd.f32 %v188_v57, %v113_v6 }
 0x114   :  { %v118_v10 = vsel %vm117_vm0, %v188_v57, %v114_v8 }
 0x115   :  { %v123_v11 = vsel %vm120_vm1, %v122_v9, %v118_v10 }
 0x116   :  { %v126_v12 = vperm.slane %v123_v11, %v248_v24 }
 0x118   :  { %128 = vst.msk [vmem:[%s273_s3 + $0x2] sm:$0x1] %vm66_vm5, %v126_v12 }
 0x119   :  { %163 = vsyncpa [#allocation4], 1 }

</bundles_post_ra>
